<compile_context>
chip_gen: v6e
topology: v6e:2x2x1
jax: 0.10.0
libtpu: 0.0.40
codegen_flags: <defaults>
</compile_context>

<pallas_src>
import jax
import jax.numpy as jnp
from jax.experimental import pallas as pl
from jax.experimental.pallas import tpu as pltpu


# ----------------------------------------------------------------------------
# Pallas kernel
# ----------------------------------------------------------------------------
def attention_gru_kernel(f_ref, g_ref, w_in_ref, b_in_ref, w_hh_ref, b_u_ref,
                         out_ref):
    B, S, D = f_ref.shape
    H = out_ref.shape[1]

    f = f_ref[...]            # (B, S, D)   bf16
    g_b = g_ref[...]          # (B, S, H)   f32  (attention gate, pre-expanded)
    w_in = w_in_ref[...]      # (D, 2H)     bf16  = [Wr^T | W^T]
    b_in = b_in_ref[...]      # (1, 2H)     f32   = [b_wr + b_ur | b_w]
    w_hh = w_hh_ref[...]      # (H, 2H)     bf16  = [Ur^T | U^T]
    b_u = b_u_ref[...]        # (1, H)      f32

    # --- off the serial chain: fact-side projections for all steps at once ---
    gi_all = (jnp.dot(f.reshape(B * S, D), w_in,
                      preferred_element_type=jnp.float32)
              + b_in).reshape(B, S, 2 * H)               # (B, S, 2H) f32
    gi_r_all = gi_all[:, :, 0:H]                         # Wr(fact) + b_wr + b_ur
    gi_n_all = gi_all[:, :, H:2 * H]                     # W (fact) + b_w

    # hoisted broadcasts / complements (not repeated inside the unrolled loop)
    omg_b = 1.0 - g_b                                    # (B, S, H)
    b_u_b = jnp.broadcast_to(b_u, (B, H))                # (B, H)

    # --- serial attention-GRU recurrence over the S facts ---
    # Python unroll is fine at S=8, H=32 (full LLO visibility, no spill);
    # switch to lax.fori_loop(..., unroll=True) if S/H are scaled up.
    C = jnp.zeros((B, H), jnp.float32)
    for j in range(S):
        gh = jnp.dot(C.astype(jnp.bfloat16), w_hh,
                     preferred_element_type=jnp.float32)           # (B, 2H)
        r = jax.nn.sigmoid(gi_r_all[:, j, :] + gh[:, 0:H])
        h_tilda = jnp.tanh(gi_n_all[:, j, :] + r * (gh[:, H:2 * H] + b_u_b))
        C = g_b[:, j, :] * h_tilda + omg_b[:, j, :] * C
    out_ref[...] = C


# ----------------------------------------------------------------------------
# Parameter packing (fold the 4 Linear layers into fused MXU operands)
# ----------------------------------------------------------------------------
def pack_params(raw):
    w_in_t = jnp.concatenate([raw["Wr_w"].T, raw["W_w"].T], axis=1)   # (D, 2H)
    w_hh_t = jnp.concatenate([raw["Ur_w"].T, raw["U_w"].T], axis=1)   # (H, 2H)
    b_in = jnp.concatenate([raw["b_wr"] + raw["b_ur"], raw["b_w"]]).reshape(1, -1)
    b_u = raw["b_u"].reshape(1, -1)
    return dict(
        w_in_t=w_in_t.astype(jnp.bfloat16),
        w_hh_t=w_hh_t.astype(jnp.bfloat16),
        b_in=b_in.astype(jnp.float32),
        b_u=b_u.astype(jnp.float32),
    )


# ----------------------------------------------------------------------------
# Wrapper
# ----------------------------------------------------------------------------
def attention_gru_forward(facts, G, packed):
    B, S, D = facts.shape
    H = packed["w_hh_t"].shape[0]
    # Pre-expand the attention gates to (B, S, H) outside the kernel (2 KB of
    # layout plumbing) so the unrolled recurrence only does cheap sublane
    # slices instead of per-step lane broadcasts.
    g3 = jnp.broadcast_to(G[:, :, None], (B, S, H)).astype(jnp.float32)
    args = (
        facts.astype(jnp.bfloat16),
        g3,
        packed["w_in_t"], packed["b_in"],
        packed["w_hh_t"], packed["b_u"],
    )
    vmem = pl.BlockSpec(memory_space=pltpu.MemorySpace.VMEM)
    return pl.pallas_call(
        attention_gru_kernel,
        out_shape=jax.ShapeDtypeStruct((B, H), jnp.float32),
        in_specs=[vmem] * len(args),
        out_specs=vmem,
    )(*args)


# ----------------------------------------------------------------------------
# Deterministic parameter init (mirrors AttentionGRUCell.__init__)
# ----------------------------------------------------------------------------
def init_raw_params(key, D, H):
    ks = jax.random.split(key, 8)

    def xavier_normal(k, shape):                  # shape = (out, in), like torch
        fan_out, fan_in = shape
        std = (2.0 / (fan_in + fan_out)) ** 0.5
        return std * jax.random.normal(k, shape, jnp.float32)

    def linear_bias(k, n, fan_in):                # torch Linear default bias init
        bound = 1.0 / (fan_in ** 0.5)
        return jax.random.uniform(k, (n,), jnp.float32, -bound, bound)

    return dict(
        Wr_w=xavier_normal(ks[0], (H, D)), b_wr=linear_bias(ks[1], H, D),
        Ur_w=xavier_normal(ks[2], (H, H)), b_ur=linear_bias(ks[3], H, H),
        W_w=xavier_normal(ks[4], (H, D)), b_w=linear_bias(ks[5], H, D),
        U_w=xavier_normal(ks[6], (H, H)), b_u=linear_bias(ks[7], H, H),
    )


# ----------------------------------------------------------------------------
# Pure-JAX reference (mirrors kernel numerics: bf16 matmul inputs, f32 accum)
# ----------------------------------------------------------------------------
def attention_gru_reference(facts, G, raw):
    B, S, D = facts.shape
    H = raw["Ur_w"].shape[0]

    def lin(x, w, b):
        return jnp.dot(x.astype(jnp.bfloat16), w.T.astype(jnp.bfloat16),
                       preferred_element_type=jnp.float32) + b

    C = jnp.zeros((B, H), jnp.float32)
    for j in range(S):
        fact = facts[:, j, :]
        g = G[:, j][:, None]
        r = jax.nn.sigmoid(lin(fact, raw["Wr_w"], raw["b_wr"])
                           + lin(C, raw["Ur_w"], raw["b_ur"]))
        h_tilda = jnp.tanh(lin(fact, raw["W_w"], raw["b_w"])
                           + r * lin(C, raw["U_w"], raw["b_u"]))
        C = g * h_tilda + (1.0 - g) * C
    return C


if __name__ == "__main__":
    # batch=2, sentences(facts)=8, input_size = hidden_size = 32
    # (the module's C init via expand_as(fact) implies input_size == hidden_size)
    B, S, D, H = 2, 8, 32, 32
    key = jax.random.PRNGKey(0)
    k_f, k_g, k_p = jax.random.split(key, 3)

    facts = jax.random.normal(k_f, (B, S, D), jnp.float32)
    # attention gates G in (0,1), as produced by the DMN gate softmax
    G = jax.nn.softmax(jax.random.normal(k_g, (B, S), jnp.float32), axis=1)

    raw = init_raw_params(k_p, D, H)
    packed = pack_params(raw)

    out = attention_gru_forward(facts, G, packed)
    out = jax.block_until_ready(out)

    ref = attention_gru_reference(facts, G, raw)
    assert out.shape == (B, H)
    assert jnp.allclose(out, ref, atol=1e-3, rtol=1e-3), (out, ref)
    print("KERNEL_OK")
</pallas_src>

<mosaic_0001>
module attributes {stable_mosaic.version = 11 : i64} {
  func.func @attention_gru_kernel(%arg0: memref<2x8x32xbf16, #tpu.memory_space<vmem>>, %arg1: memref<2x8x32xf32, #tpu.memory_space<vmem>>, %arg2: memref<32x64xbf16, #tpu.memory_space<vmem>>, %arg3: memref<1x64xf32, #tpu.memory_space<vmem>>, %arg4: memref<32x64xbf16, #tpu.memory_space<vmem>>, %arg5: memref<1x32xf32, #tpu.memory_space<vmem>>, %arg6: memref<2x32xf32, #tpu.memory_space<vmem>>) attributes {dimension_semantics = [], scalar_prefetch = 0 : i64, scratch_operands = 0 : i64, tpu.core_type = #tpu.core_type<tc>} {
    %c0 = arith.constant 0 : index
    %c0_0 = arith.constant 0 : index
    %c0_1 = arith.constant 0 : index
    %0 = vector.load %arg0[%c0, %c0_0, %c0_1] : memref<2x8x32xbf16, #tpu.memory_space<vmem>>, vector<2x8x32xbf16>
    %c0_2 = arith.constant 0 : index
    %c0_3 = arith.constant 0 : index
    %c0_4 = arith.constant 0 : index
    %1 = vector.load %arg1[%c0_2, %c0_3, %c0_4] : memref<2x8x32xf32, #tpu.memory_space<vmem>>, vector<2x8x32xf32>
    %c0_5 = arith.constant 0 : index
    %c0_6 = arith.constant 0 : index
    %2 = vector.load %arg2[%c0_5, %c0_6] : memref<32x64xbf16, #tpu.memory_space<vmem>>, vector<32x64xbf16>
    %c0_7 = arith.constant 0 : index
    %c0_8 = arith.constant 0 : index
    %3 = vector.load %arg3[%c0_7, %c0_8] : memref<1x64xf32, #tpu.memory_space<vmem>>, vector<1x64xf32>
    %c0_9 = arith.constant 0 : index
    %c0_10 = arith.constant 0 : index
    %4 = vector.load %arg4[%c0_9, %c0_10] : memref<32x64xbf16, #tpu.memory_space<vmem>>, vector<32x64xbf16>
    %c0_11 = arith.constant 0 : index
    %c0_12 = arith.constant 0 : index
    %5 = vector.load %arg5[%c0_11, %c0_12] : memref<1x32xf32, #tpu.memory_space<vmem>>, vector<1x32xf32>
    %6 = vector.shape_cast %0 : vector<2x8x32xbf16> to vector<16x32xbf16>
    %cst = arith.constant dense<0.000000e+00> : vector<16x64xf32>
    %7 = tpu.matmul %6, %2, %cst {dimension_numbers = #tpu.dot_dimension_numbers<[1], [0], [0], [1], [0, 0, 1, 1], [], []>} : vector<16x32xbf16>, vector<32x64xbf16>, vector<16x64xf32> -> vector<16x64xf32>
    %8 = vector.broadcast %3 : vector<1x64xf32> to vector<16x64xf32>
    %9 = arith.addf %7, %8 : vector<16x64xf32>
    %10 = vector.shape_cast %9 : vector<16x64xf32> to vector<2x8x64xf32>
    %11 = vector.extract_strided_slice %10 {offsets = [0, 0, 0], sizes = [2, 8, 32], strides = [1, 1, 1]} : vector<2x8x64xf32> to vector<2x8x32xf32>
    %12 = vector.extract_strided_slice %10 {offsets = [0, 0, 32], sizes = [2, 8, 32], strides = [1, 1, 1]} : vector<2x8x64xf32> to vector<2x8x32xf32>
    %cst_13 = arith.constant 1.000000e+00 : f32
    %13 = vector.broadcast %cst_13 : f32 to vector<2x8x32xf32>
    %14 = arith.subf %13, %1 : vector<2x8x32xf32>
    %15 = vector.shape_cast %5 : vector<1x32xf32> to vector<1x32xf32>
    %16 = vector.broadcast %15 : vector<1x32xf32> to vector<2x32xf32>
    %cst_14 = arith.constant 0.000000e+00 : f32
    %17 = vector.broadcast %cst_14 : f32 to vector<2x32xf32>
    %18 = arith.truncf %17 : vector<2x32xf32> to vector<2x32xbf16>
    %cst_15 = arith.constant dense<0.000000e+00> : vector<2x64xf32>
    %19 = tpu.matmul %18, %4, %cst_15 {dimension_numbers = #tpu.dot_dimension_numbers<[1], [0], [0], [1], [0, 0, 1, 1], [], []>} : vector<2x32xbf16>, vector<32x64xbf16>, vector<2x64xf32> -> vector<2x64xf32>
    %20 = vector.extract_strided_slice %11 {offsets = [0, 0, 0], sizes = [2, 1, 32], strides = [1, 1, 1]} : vector<2x8x32xf32> to vector<2x1x32xf32>
    %21 = vector.shape_cast %20 : vector<2x1x32xf32> to vector<2x32xf32>
    %22 = vector.extract_strided_slice %19 {offsets = [0, 0], sizes = [2, 32], strides = [1, 1]} : vector<2x64xf32> to vector<2x32xf32>
    %23 = arith.addf %21, %22 : vector<2x32xf32>
    %24 = arith.negf %23 : vector<2x32xf32>
    %25 = math.exp %24 : vector<2x32xf32>
    %cst_16 = arith.constant 1.000000e+00 : f32
    %26 = vector.broadcast %cst_16 : f32 to vector<2x32xf32>
    %27 = arith.addf %26, %25 : vector<2x32xf32>
    %28 = arith.divf %26, %27 : vector<2x32xf32>
    %29 = vector.extract_strided_slice %12 {offsets = [0, 0, 0], sizes = [2, 1, 32], strides = [1, 1, 1]} : vector<2x8x32xf32> to vector<2x1x32xf32>
    %30 = vector.shape_cast %29 : vector<2x1x32xf32> to vector<2x32xf32>
    %31 = vector.extract_strided_slice %19 {offsets = [0, 32], sizes = [2, 32], strides = [1, 1]} : vector<2x64xf32> to vector<2x32xf32>
    %32 = arith.addf %31, %16 : vector<2x32xf32>
    %33 = arith.mulf %28, %32 : vector<2x32xf32>
    %34 = arith.addf %30, %33 : vector<2x32xf32>
    %35 = math.tanh %34 : vector<2x32xf32>
    %36 = vector.extract_strided_slice %1 {offsets = [0, 0, 0], sizes = [2, 1, 32], strides = [1, 1, 1]} : vector<2x8x32xf32> to vector<2x1x32xf32>
    %37 = vector.shape_cast %36 : vector<2x1x32xf32> to vector<2x32xf32>
    %38 = arith.mulf %37, %35 : vector<2x32xf32>
    %39 = vector.extract_strided_slice %14 {offsets = [0, 0, 0], sizes = [2, 1, 32], strides = [1, 1, 1]} : vector<2x8x32xf32> to vector<2x1x32xf32>
    %40 = vector.shape_cast %39 : vector<2x1x32xf32> to vector<2x32xf32>
    %41 = arith.mulf %40, %17 : vector<2x32xf32>
    %42 = arith.addf %38, %41 : vector<2x32xf32>
    %43 = arith.truncf %42 : vector<2x32xf32> to vector<2x32xbf16>
    %cst_17 = arith.constant dense<0.000000e+00> : vector<2x64xf32>
    %44 = tpu.matmul %43, %4, %cst_17 {dimension_numbers = #tpu.dot_dimension_numbers<[1], [0], [0], [1], [0, 0, 1, 1], [], []>} : vector<2x32xbf16>, vector<32x64xbf16>, vector<2x64xf32> -> vector<2x64xf32>
    %45 = vector.extract_strided_slice %11 {offsets = [0, 1, 0], sizes = [2, 1, 32], strides = [1, 1, 1]} : vector<2x8x32xf32> to vector<2x1x32xf32>
    %46 = vector.shape_cast %45 : vector<2x1x32xf32> to vector<2x32xf32>
    %47 = vector.extract_strided_slice %44 {offsets = [0, 0], sizes = [2, 32], strides = [1, 1]} : vector<2x64xf32> to vector<2x32xf32>
    %48 = arith.addf %46, %47 : vector<2x32xf32>
    %49 = arith.negf %48 : vector<2x32xf32>
    %50 = math.exp %49 : vector<2x32xf32>
    %cst_18 = arith.constant 1.000000e+00 : f32
    %51 = vector.broadcast %cst_18 : f32 to vector<2x32xf32>
    %52 = arith.addf %51, %50 : vector<2x32xf32>
    %53 = arith.divf %51, %52 : vector<2x32xf32>
    %54 = vector.extract_strided_slice %12 {offsets = [0, 1, 0], sizes = [2, 1, 32], strides = [1, 1, 1]} : vector<2x8x32xf32> to vector<2x1x32xf32>
    %55 = vector.shape_cast %54 : vector<2x1x32xf32> to vector<2x32xf32>
    %56 = vector.extract_strided_slice %44 {offsets = [0, 32], sizes = [2, 32], strides = [1, 1]} : vector<2x64xf32> to vector<2x32xf32>
    %57 = arith.addf %56, %16 : vector<2x32xf32>
    %58 = arith.mulf %53, %57 : vector<2x32xf32>
    %59 = arith.addf %55, %58 : vector<2x32xf32>
    %60 = math.tanh %59 : vector<2x32xf32>
    %61 = vector.extract_strided_slice %1 {offsets = [0, 1, 0], sizes = [2, 1, 32], strides = [1, 1, 1]} : vector<2x8x32xf32> to vector<2x1x32xf32>
    %62 = vector.shape_cast %61 : vector<2x1x32xf32> to vector<2x32xf32>
    %63 = arith.mulf %62, %60 : vector<2x32xf32>
    %64 = vector.extract_strided_slice %14 {offsets = [0, 1, 0], sizes = [2, 1, 32], strides = [1, 1, 1]} : vector<2x8x32xf32> to vector<2x1x32xf32>
    %65 = vector.shape_cast %64 : vector<2x1x32xf32> to vector<2x32xf32>
    %66 = arith.mulf %65, %42 : vector<2x32xf32>
    %67 = arith.addf %63, %66 : vector<2x32xf32>
    %68 = arith.truncf %67 : vector<2x32xf32> to vector<2x32xbf16>
    %cst_19 = arith.constant dense<0.000000e+00> : vector<2x64xf32>
    %69 = tpu.matmul %68, %4, %cst_19 {dimension_numbers = #tpu.dot_dimension_numbers<[1], [0], [0], [1], [0, 0, 1, 1], [], []>} : vector<2x32xbf16>, vector<32x64xbf16>, vector<2x64xf32> -> vector<2x64xf32>
    %70 = vector.extract_strided_slice %11 {offsets = [0, 2, 0], sizes = [2, 1, 32], strides = [1, 1, 1]} : vector<2x8x32xf32> to vector<2x1x32xf32>
    %71 = vector.shape_cast %70 : vector<2x1x32xf32> to vector<2x32xf32>
    %72 = vector.extract_strided_slice %69 {offsets = [0, 0], sizes = [2, 32], strides = [1, 1]} : vector<2x64xf32> to vector<2x32xf32>
    %73 = arith.addf %71, %72 : vector<2x32xf32>
    %74 = arith.negf %73 : vector<2x32xf32>
    %75 = math.exp %74 : vector<2x32xf32>
    %cst_20 = arith.constant 1.000000e+00 : f32
    %76 = vector.broadcast %cst_20 : f32 to vector<2x32xf32>
    %77 = arith.addf %76, %75 : vector<2x32xf32>
    %78 = arith.divf %76, %77 : vector<2x32xf32>
    %79 = vector.extract_strided_slice %12 {offsets = [0, 2, 0], sizes = [2, 1, 32], strides = [1, 1, 1]} : vector<2x8x32xf32> to vector<2x1x32xf32>
    %80 = vector.shape_cast %79 : vector<2x1x32xf32> to vector<2x32xf32>
    %81 = vector.extract_strided_slice %69 {offsets = [0, 32], sizes = [2, 32], strides = [1, 1]} : vector<2x64xf32> to vector<2x32xf32>
    %82 = arith.addf %81, %16 : vector<2x32xf32>
    %83 = arith.mulf %78, %82 : vector<2x32xf32>
    %84 = arith.addf %80, %83 : vector<2x32xf32>
    %85 = math.tanh %84 : vector<2x32xf32>
    %86 = vector.extract_strided_slice %1 {offsets = [0, 2, 0], sizes = [2, 1, 32], strides = [1, 1, 1]} : vector<2x8x32xf32> to vector<2x1x32xf32>
    %87 = vector.shape_cast %86 : vector<2x1x32xf32> to vector<2x32xf32>
    %88 = arith.mulf %87, %85 : vector<2x32xf32>
    %89 = vector.extract_strided_slice %14 {offsets = [0, 2, 0], sizes = [2, 1, 32], strides = [1, 1, 1]} : vector<2x8x32xf32> to vector<2x1x32xf32>
    %90 = vector.shape_cast %89 : vector<2x1x32xf32> to vector<2x32xf32>
    %91 = arith.mulf %90, %67 : vector<2x32xf32>
    %92 = arith.addf %88, %91 : vector<2x32xf32>
    %93 = arith.truncf %92 : vector<2x32xf32> to vector<2x32xbf16>
    %cst_21 = arith.constant dense<0.000000e+00> : vector<2x64xf32>
    %94 = tpu.matmul %93, %4, %cst_21 {dimension_numbers = #tpu.dot_dimension_numbers<[1], [0], [0], [1], [0, 0, 1, 1], [], []>} : vector<2x32xbf16>, vector<32x64xbf16>, vector<2x64xf32> -> vector<2x64xf32>
    %95 = vector.extract_strided_slice %11 {offsets = [0, 3, 0], sizes = [2, 1, 32], strides = [1, 1, 1]} : vector<2x8x32xf32> to vector<2x1x32xf32>
    %96 = vector.shape_cast %95 : vector<2x1x32xf32> to vector<2x32xf32>
    %97 = vector.extract_strided_slice %94 {offsets = [0, 0], sizes = [2, 32], strides = [1, 1]} : vector<2x64xf32> to vector<2x32xf32>
    %98 = arith.addf %96, %97 : vector<2x32xf32>
    %99 = arith.negf %98 : vector<2x32xf32>
    %100 = math.exp %99 : vector<2x32xf32>
    %cst_22 = arith.constant 1.000000e+00 : f32
    %101 = vector.broadcast %cst_22 : f32 to vector<2x32xf32>
    %102 = arith.addf %101, %100 : vector<2x32xf32>
    %103 = arith.divf %101, %102 : vector<2x32xf32>
    %104 = vector.extract_strided_slice %12 {offsets = [0, 3, 0], sizes = [2, 1, 32], strides = [1, 1, 1]} : vector<2x8x32xf32> to vector<2x1x32xf32>
    %105 = vector.shape_cast %104 : vector<2x1x32xf32> to vector<2x32xf32>
    %106 = vector.extract_strided_slice %94 {offsets = [0, 32], sizes = [2, 32], strides = [1, 1]} : vector<2x64xf32> to vector<2x32xf32>
    %107 = arith.addf %106, %16 : vector<2x32xf32>
    %108 = arith.mulf %103, %107 : vector<2x32xf32>
    %109 = arith.addf %105, %108 : vector<2x32xf32>
    %110 = math.tanh %109 : vector<2x32xf32>
    %111 = vector.extract_strided_slice %1 {offsets = [0, 3, 0], sizes = [2, 1, 32], strides = [1, 1, 1]} : vector<2x8x32xf32> to vector<2x1x32xf32>
    %112 = vector.shape_cast %111 : vector<2x1x32xf32> to vector<2x32xf32>
    %113 = arith.mulf %112, %110 : vector<2x32xf32>
    %114 = vector.extract_strided_slice %14 {offsets = [0, 3, 0], sizes = [2, 1, 32], strides = [1, 1, 1]} : vector<2x8x32xf32> to vector<2x1x32xf32>
    %115 = vector.shape_cast %114 : vector<2x1x32xf32> to vector<2x32xf32>
    %116 = arith.mulf %115, %92 : vector<2x32xf32>
    %117 = arith.addf %113, %116 : vector<2x32xf32>
    %118 = arith.truncf %117 : vector<2x32xf32> to vector<2x32xbf16>
    %cst_23 = arith.constant dense<0.000000e+00> : vector<2x64xf32>
    %119 = tpu.matmul %118, %4, %cst_23 {dimension_numbers = #tpu.dot_dimension_numbers<[1], [0], [0], [1], [0, 0, 1, 1], [], []>} : vector<2x32xbf16>, vector<32x64xbf16>, vector<2x64xf32> -> vector<2x64xf32>
    %120 = vector.extract_strided_slice %11 {offsets = [0, 4, 0], sizes = [2, 1, 32], strides = [1, 1, 1]} : vector<2x8x32xf32> to vector<2x1x32xf32>
    %121 = vector.shape_cast %120 : vector<2x1x32xf32> to vector<2x32xf32>
    %122 = vector.extract_strided_slice %119 {offsets = [0, 0], sizes = [2, 32], strides = [1, 1]} : vector<2x64xf32> to vector<2x32xf32>
    %123 = arith.addf %121, %122 : vector<2x32xf32>
    %124 = arith.negf %123 : vector<2x32xf32>
    %125 = math.exp %124 : vector<2x32xf32>
    %cst_24 = arith.constant 1.000000e+00 : f32
    %126 = vector.broadcast %cst_24 : f32 to vector<2x32xf32>
    %127 = arith.addf %126, %125 : vector<2x32xf32>
    %128 = arith.divf %126, %127 : vector<2x32xf32>
    %129 = vector.extract_strided_slice %12 {offsets = [0, 4, 0], sizes = [2, 1, 32], strides = [1, 1, 1]} : vector<2x8x32xf32> to vector<2x1x32xf32>
    %130 = vector.shape_cast %129 : vector<2x1x32xf32> to vector<2x32xf32>
    %131 = vector.extract_strided_slice %119 {offsets = [0, 32], sizes = [2, 32], strides = [1, 1]} : vector<2x64xf32> to vector<2x32xf32>
    %132 = arith.addf %131, %16 : vector<2x32xf32>
    %133 = arith.mulf %128, %132 : vector<2x32xf32>
    %134 = arith.addf %130, %133 : vector<2x32xf32>
    %135 = math.tanh %134 : vector<2x32xf32>
    %136 = vector.extract_strided_slice %1 {offsets = [0, 4, 0], sizes = [2, 1, 32], strides = [1, 1, 1]} : vector<2x8x32xf32> to vector<2x1x32xf32>
    %137 = vector.shape_cast %136 : vector<2x1x32xf32> to vector<2x32xf32>
    %138 = arith.mulf %137, %135 : vector<2x32xf32>
    %139 = vector.extract_strided_slice %14 {offsets = [0, 4, 0], sizes = [2, 1, 32], strides = [1, 1, 1]} : vector<2x8x32xf32> to vector<2x1x32xf32>
    %140 = vector.shape_cast %139 : vector<2x1x32xf32> to vector<2x32xf32>
    %141 = arith.mulf %140, %117 : vector<2x32xf32>
    %142 = arith.addf %138, %141 : vector<2x32xf32>
    %143 = arith.truncf %142 : vector<2x32xf32> to vector<2x32xbf16>
    %cst_25 = arith.constant dense<0.000000e+00> : vector<2x64xf32>
    %144 = tpu.matmul %143, %4, %cst_25 {dimension_numbers = #tpu.dot_dimension_numbers<[1], [0], [0], [1], [0, 0, 1, 1], [], []>} : vector<2x32xbf16>, vector<32x64xbf16>, vector<2x64xf32> -> vector<2x64xf32>
    %145 = vector.extract_strided_slice %11 {offsets = [0, 5, 0], sizes = [2, 1, 32], strides = [1, 1, 1]} : vector<2x8x32xf32> to vector<2x1x32xf32>
    %146 = vector.shape_cast %145 : vector<2x1x32xf32> to vector<2x32xf32>
    %147 = vector.extract_strided_slice %144 {offsets = [0, 0], sizes = [2, 32], strides = [1, 1]} : vector<2x64xf32> to vector<2x32xf32>
    %148 = arith.addf %146, %147 : vector<2x32xf32>
    %149 = arith.negf %148 : vector<2x32xf32>
    %150 = math.exp %149 : vector<2x32xf32>
    %cst_26 = arith.constant 1.000000e+00 : f32
    %151 = vector.broadcast %cst_26 : f32 to vector<2x32xf32>
    %152 = arith.addf %151, %150 : vector<2x32xf32>
    %153 = arith.divf %151, %152 : vector<2x32xf32>
    %154 = vector.extract_strided_slice %12 {offsets = [0, 5, 0], sizes = [2, 1, 32], strides = [1, 1, 1]} : vector<2x8x32xf32> to vector<2x1x32xf32>
    %155 = vector.shape_cast %154 : vector<2x1x32xf32> to vector<2x32xf32>
    %156 = vector.extract_strided_slice %144 {offsets = [0, 32], sizes = [2, 32], strides = [1, 1]} : vector<2x64xf32> to vector<2x32xf32>
    %157 = arith.addf %156, %16 : vector<2x32xf32>
    %158 = arith.mulf %153, %157 : vector<2x32xf32>
    %159 = arith.addf %155, %158 : vector<2x32xf32>
    %160 = math.tanh %159 : vector<2x32xf32>
    %161 = vector.extract_strided_slice %1 {offsets = [0, 5, 0], sizes = [2, 1, 32], strides = [1, 1, 1]} : vector<2x8x32xf32> to vector<2x1x32xf32>
    %162 = vector.shape_cast %161 : vector<2x1x32xf32> to vector<2x32xf32>
    %163 = arith.mulf %162, %160 : vector<2x32xf32>
    %164 = vector.extract_strided_slice %14 {offsets = [0, 5, 0], sizes = [2, 1, 32], strides = [1, 1, 1]} : vector<2x8x32xf32> to vector<2x1x32xf32>
    %165 = vector.shape_cast %164 : vector<2x1x32xf32> to vector<2x32xf32>
    %166 = arith.mulf %165, %142 : vector<2x32xf32>
    %167 = arith.addf %163, %166 : vector<2x32xf32>
    %168 = arith.truncf %167 : vector<2x32xf32> to vector<2x32xbf16>
    %cst_27 = arith.constant dense<0.000000e+00> : vector<2x64xf32>
    %169 = tpu.matmul %168, %4, %cst_27 {dimension_numbers = #tpu.dot_dimension_numbers<[1], [0], [0], [1], [0, 0, 1, 1], [], []>} : vector<2x32xbf16>, vector<32x64xbf16>, vector<2x64xf32> -> vector<2x64xf32>
    %170 = vector.extract_strided_slice %11 {offsets = [0, 6, 0], sizes = [2, 1, 32], strides = [1, 1, 1]} : vector<2x8x32xf32> to vector<2x1x32xf32>
    %171 = vector.shape_cast %170 : vector<2x1x32xf32> to vector<2x32xf32>
    %172 = vector.extract_strided_slice %169 {offsets = [0, 0], sizes = [2, 32], strides = [1, 1]} : vector<2x64xf32> to vector<2x32xf32>
    %173 = arith.addf %171, %172 : vector<2x32xf32>
    %174 = arith.negf %173 : vector<2x32xf32>
    %175 = math.exp %174 : vector<2x32xf32>
    %cst_28 = arith.constant 1.000000e+00 : f32
    %176 = vector.broadcast %cst_28 : f32 to vector<2x32xf32>
    %177 = arith.addf %176, %175 : vector<2x32xf32>
    %178 = arith.divf %176, %177 : vector<2x32xf32>
    %179 = vector.extract_strided_slice %12 {offsets = [0, 6, 0], sizes = [2, 1, 32], strides = [1, 1, 1]} : vector<2x8x32xf32> to vector<2x1x32xf32>
    %180 = vector.shape_cast %179 : vector<2x1x32xf32> to vector<2x32xf32>
    %181 = vector.extract_strided_slice %169 {offsets = [0, 32], sizes = [2, 32], strides = [1, 1]} : vector<2x64xf32> to vector<2x32xf32>
    %182 = arith.addf %181, %16 : vector<2x32xf32>
    %183 = arith.mulf %178, %182 : vector<2x32xf32>
    %184 = arith.addf %180, %183 : vector<2x32xf32>
    %185 = math.tanh %184 : vector<2x32xf32>
    %186 = vector.extract_strided_slice %1 {offsets = [0, 6, 0], sizes = [2, 1, 32], strides = [1, 1, 1]} : vector<2x8x32xf32> to vector<2x1x32xf32>
    %187 = vector.shape_cast %186 : vector<2x1x32xf32> to vector<2x32xf32>
    %188 = arith.mulf %187, %185 : vector<2x32xf32>
    %189 = vector.extract_strided_slice %14 {offsets = [0, 6, 0], sizes = [2, 1, 32], strides = [1, 1, 1]} : vector<2x8x32xf32> to vector<2x1x32xf32>
    %190 = vector.shape_cast %189 : vector<2x1x32xf32> to vector<2x32xf32>
    %191 = arith.mulf %190, %167 : vector<2x32xf32>
    %192 = arith.addf %188, %191 : vector<2x32xf32>
    %193 = arith.truncf %192 : vector<2x32xf32> to vector<2x32xbf16>
    %cst_29 = arith.constant dense<0.000000e+00> : vector<2x64xf32>
    %194 = tpu.matmul %193, %4, %cst_29 {dimension_numbers = #tpu.dot_dimension_numbers<[1], [0], [0], [1], [0, 0, 1, 1], [], []>} : vector<2x32xbf16>, vector<32x64xbf16>, vector<2x64xf32> -> vector<2x64xf32>
    %195 = vector.extract_strided_slice %11 {offsets = [0, 7, 0], sizes = [2, 1, 32], strides = [1, 1, 1]} : vector<2x8x32xf32> to vector<2x1x32xf32>
    %196 = vector.shape_cast %195 : vector<2x1x32xf32> to vector<2x32xf32>
    %197 = vector.extract_strided_slice %194 {offsets = [0, 0], sizes = [2, 32], strides = [1, 1]} : vector<2x64xf32> to vector<2x32xf32>
    %198 = arith.addf %196, %197 : vector<2x32xf32>
    %199 = arith.negf %198 : vector<2x32xf32>
    %200 = math.exp %199 : vector<2x32xf32>
    %cst_30 = arith.constant 1.000000e+00 : f32
    %201 = vector.broadcast %cst_30 : f32 to vector<2x32xf32>
    %202 = arith.addf %201, %200 : vector<2x32xf32>
    %203 = arith.divf %201, %202 : vector<2x32xf32>
    %204 = vector.extract_strided_slice %12 {offsets = [0, 7, 0], sizes = [2, 1, 32], strides = [1, 1, 1]} : vector<2x8x32xf32> to vector<2x1x32xf32>
    %205 = vector.shape_cast %204 : vector<2x1x32xf32> to vector<2x32xf32>
    %206 = vector.extract_strided_slice %194 {offsets = [0, 32], sizes = [2, 32], strides = [1, 1]} : vector<2x64xf32> to vector<2x32xf32>
    %207 = arith.addf %206, %16 : vector<2x32xf32>
    %208 = arith.mulf %203, %207 : vector<2x32xf32>
    %209 = arith.addf %205, %208 : vector<2x32xf32>
    %210 = math.tanh %209 : vector<2x32xf32>
    %211 = vector.extract_strided_slice %1 {offsets = [0, 7, 0], sizes = [2, 1, 32], strides = [1, 1, 1]} : vector<2x8x32xf32> to vector<2x1x32xf32>
    %212 = vector.shape_cast %211 : vector<2x1x32xf32> to vector<2x32xf32>
    %213 = arith.mulf %212, %210 : vector<2x32xf32>
    %214 = vector.extract_strided_slice %14 {offsets = [0, 7, 0], sizes = [2, 1, 32], strides = [1, 1, 1]} : vector<2x8x32xf32> to vector<2x1x32xf32>
    %215 = vector.shape_cast %214 : vector<2x1x32xf32> to vector<2x32xf32>
    %216 = arith.mulf %215, %192 : vector<2x32xf32>
    %217 = arith.addf %213, %216 : vector<2x32xf32>
    %c0_31 = arith.constant 0 : index
    %c0_32 = arith.constant 0 : index
    %218 = vector.load %arg6[%c0_31, %c0_32] : memref<2x32xf32, #tpu.memory_space<vmem>>, vector<2x32xf32>
    tpu.vector_store %arg6[%c0_31, %c0_32], %217 {strides = array<i32>} : memref<2x32xf32, #tpu.memory_space<vmem>>, vector<2x32xf32>,
    return
  }
}

</mosaic_0001>

<bundles_post_ra>
// kernel: tpu_custom_call.1
= control target key start
LH: loop header
LB: loop body
LE: loop exit
PB: predicated region body
PF: predicated region fallthrough
CT: control target
= control target key end

     0   :  { %11 = vsyncpa [#allocation3], 0  ;;  %s1758_s0 = inlined_call_operand.hbm [shape: bf16[2,8,32], index: 0, kind: input, shape index: {}]   ;;  %s1759_s1 = inlined_call_operand.hbm [shape: f32[2,8,32], index: 1, kind: input, shape index: {}]   ;;  %s1760_s2 = inlined_call_operand.hbm [shape: bf16[32,64], index: 2, kind: input, shape index: {}]   ;;  %s1761_s3 = inlined_call_operand.vmem [shape: f32[1,64], index: 3, kind: input, shape index: {}]   ;;  %s1762_s4 = inlined_call_operand.hbm [shape: bf16[32,64], index: 4, kind: input, shape index: {}]   ;;  %s1763_s5 = inlined_call_operand.vmem [shape: f32[1,32], index: 5, kind: input, shape index: {}]   ;;  %s1764_s6 = inlined_call_operand.hbm [shape: f32[2,32], index: 6, kind: output, shape index: {}]  }
   0x1   :  { %12 = vsyncpa [#allocation6], 0 }
   0x2   :  { %13 = vsyncpa [#allocation9], 0 }
   0x3   :  { %14 = vsyncpa [#allocation4], 0  ;;  %s1470_s21 = smov [#allocation5]  }
   0x4   :  { %s32_s22 = sshll.u32 %s1470_s21, 4  ;;  %s33_s22 = int_to_ptr.vmem [resolvable:$true] %s32_s22 }
   0x5   :  { %s1370_s23 = scalar_lea.vmem %s33_s22, 256  ;;  %p1375_p1 = scmp.lt.s32.totalorder %s33_s22, %s33_s22 }
   0x6   :  { %p1371_p0 = scmp.ne.s32.totalorder %s33_s22, %s1370_s23  ;;  %p1376_p2 = scmp.lt.s32.totalorder %s1370_s23, %s1370_s23 }
   0x8   :  { %p1377_p3 = por %p1376_p2, %p1375_p1 }
   0xa   :  { %p1378_p4 = pnand %p1377_p3, %p1371_p0 }
   0xc   :  { %1381 = shalt.err (!%p1378_p4)
}
   0xd   :  { %s1471_s24 = smov 128   ;;  %s1472_s25 = smov 8  }
   0xe   :  { %38 = dma.hbm_to_vmem [thread:$0]  %s1759_s1, 256, %s33_s22, [#allocation6], %s1471_s24, %s1471_s24, %s1472_s25  }
   0xf   :  { %s1473_s28 = smov [#allocation2]  }
  0x10   :  { %s20_s29 = sshll.u32 %s1473_s28, 4  ;;  %s21_s29 = int_to_ptr.vmem [resolvable:$true] %s20_s29 }
  0x11   :  { %s1390_s30 = scalar_lea.vmem %s21_s29, 128  ;;  %p1395_p6 = scmp.lt.s32.totalorder %s21_s29, %s21_s29 }
  0x12   :  { %p1391_p5 = scmp.ne.s32.totalorder %s21_s29, %s1390_s30  ;;  %p1396_p7 = scmp.lt.s32.totalorder %s1390_s30, %s1390_s30 }
  0x14   :  { %p1397_p8 = por %p1396_p7, %p1395_p6 }
  0x16   :  { %p1398_p9 = pnand %p1397_p8, %p1391_p5 }
  0x18   :  { %1401 = shalt.err (!%p1398_p9)
}
  0x19   :  { %s1474_s7 = smov 64   ;;  %s1475_s8 = smov 4  }
  0x1a   :  { %26 = dma.hbm_to_vmem [thread:$0]  %s1758_s0, 128, %s21_s29, [#allocation3], %s1474_s7, %s1474_s7, %s1475_s8  }
  0x1b   :  { %s1476_s11 = smov [#allocation7]   ;;  %s1477_s13 = smov [#allocation8]  }
  0x1c   :  { %s44_s12 = sshll.u32 %s1476_s11, 4  ;;  %s58_s1 = sshll.u32 %s1477_s13, 4  ;;  %s45_s12 = int_to_ptr.vmem [resolvable:$true] %s44_s12  ;;  %s59_s1 = int_to_ptr.vmem [resolvable:$true] %s58_s1 }
  0x1d   :  { %s1410_s14 = scalar_lea.vmem %s45_s12, 256  ;;  %p1415_p11 = scmp.lt.s32.totalorder %s45_s12, %s45_s12 }
  0x1e   :  { %p1411_p10 = scmp.ne.s32.totalorder %s45_s12, %s1410_s14  ;;  %p1416_p12 = scmp.lt.s32.totalorder %s1410_s14, %s1410_s14 }
  0x20   :  { %p1417_p13 = por %p1416_p12, %p1415_p11 }
  0x22   :  { %p1418_p0 = pnand %p1417_p13, %p1411_p10 }
  0x24   :  { %1421 = shalt.err (!%p1418_p0)
}
  0x25   :  { %50 = dma.hbm_to_vmem [thread:$0]  %s1760_s2, 256, %s45_s12, [#allocation6], %s1474_s7, %s1474_s7, %s1475_s8  }
  0x26   :  { %s1430_s17 = scalar_lea.vmem %s59_s1, 256  ;;  %p1435_p2 = scmp.lt.s32.totalorder %s59_s1, %s59_s1 }
  0x27   :  { %p1431_p1 = scmp.ne.s32.totalorder %s59_s1, %s1430_s17  ;;  %p1436_p3 = scmp.lt.s32.totalorder %s1430_s17, %s1430_s17 }
  0x29   :  { %p1437_p4 = por %p1436_p3, %p1435_p2 }
  0x2b   :  { %p1438_p5 = pnand %p1437_p4, %p1431_p1 }
  0x2d   :  { %1441 = shalt.err (!%p1438_p5)
}
  0x2e   :  { %64 = dma.hbm_to_vmem [thread:$0]  %s1762_s4, 256, %s59_s1, [#allocation9], %s1474_s7, %s1474_s7, %s1475_s8  }
  0x2f   :  { %1462 = dma.done.wait [#allocation3], 128  }
  0x30   :  { %1463 = vsyncadd [#allocation3], 4294967168 }
  0x31   :  { %1464 = dma.done.wait [#allocation6], 512  }
  0x32   :  { %1465 = vsyncadd [#allocation6], 4294966784 }
  0x33   :  { %1466 = dma.done.wait [#allocation9], 256  }
  0x34   :  { %1467 = vsyncadd [#allocation9], 4294967040  ;;  %v1478_v0 = vmov 0.0   ;;  %vm1479_vm0 = vmmov 0   ;;  %v1261_v1 = vld [vmem:[#allocation7 + $0x8] sm:$0xff]   ;;  %v1537_v2 = vld [vmem:[#allocation8 + $0x8] sm:$0xff]  }
  0x35   :  { %1175 = vmatprep.subr.bf16.mxu0 %v1478_v0  ;;  %1183 = vmatprep.subr.bf16.mxu1 %v1478_v0  ;;  %v1263_v3 = vld [vmem:[#allocation7] sm:$0xff]   ;;  %v1541_v4 = vld [vmem:[#allocation8] sm:$0xff]   ;;  %v1265_v5 = vld [vmem:[#allocation2] sm:$0xff]   ;;  %vm117_vm1 = vcmask 261120   ;;  %s1480_s19 = smov 32   ;;  %v1481_v7 = vmov 0  }
  0x36   :  { %1179 = vmatprep.mubr.msk.bf16.mxu0 %vm1479_vm0, %v1478_v0  ;;  %1187 = vmatprep.mubr.msk.bf16.mxu1 %vm1479_vm0, %v1478_v0  ;;  %v1122_v6 = vld [vmem:[%s1763_s5] ss:$0 sm:$0xff]  ;;  %s1482_s5 = smov 96   ;;  %v1584_v43 = vld [vmem:[#allocation5] sm:$0xff]  ;;  %v1586_v44 = vld [vmem:[#allocation5 + $0x8] sm:$0xff]  ;;  %vm289_vm2 = vcmask 1041409  }
  0x37   :  { %1176 = vmatpush3.bf16.msra.mxu0 %v1261_v1  ;;  %1184 = vmatpush3.bf16.msra.mxu1 %v1537_v2  ;;  %v1117_v19 = vld [vmem:[%s1761_s3] ss:$0 sm:$0xff]  ;;  %v1589_v45 = vsub.f32 1.0, %v1584_v43  ;;  %v1592_v46 = vsub.f32 1.0, %v1586_v44  ;;  %s1483_s3 = smov [#allocation10]   ;;  %vm1096_vm3 = vcmask 261127  }
  0x38   :  { %1177 = vmatprep.subr.bf16.mxu0 %v1478_v0  ;;  %1185 = vmatprep.subr.bf16.mxu1 %v1478_v0  ;;  %s1106_s22 = sshll.u32 %s1483_s3, 4  ;;  %vm1098_vm4 = vcmask 253952   ;;  %s1107_s22 = int_to_ptr.vmem [resolvable:$true] %s1106_s22 }
  0x39   :  { %242 = vrot.lane.b32.xlu0 %v1122_v6, %s1480_s19  ;;  %v278_v47 = vmul.f32 0.0, %v1589_v45  ;;  %v279_v50 = vmul.f32 0.0, %v1592_v46  ;;  %s1442_s23 = scalar_lea.vmem %s1107_s22, 32  ;;  %p1447_p7 = scmp.lt.s32.totalorder %s1107_s22, %s1107_s22 }
  0x3a   :  { %p1443_p6 = scmp.ne.s32.totalorder %s1107_s22, %s1442_s23  ;;  %p1448_p8 = scmp.lt.s32.totalorder %s1442_s23, %s1442_s23 }
  0x3b   :  { %1178 = vmatpush3.bf16.msra.mxu0 %v1263_v3  ;;  %1186 = vmatpush3.bf16.msra.mxu1 %v1541_v4 }
  0x3c   :  { %1191 = vmatprep.subr.bf16.mxu0 %v1478_v0  ;;  %1199 = vmatprep.subr.bf16.mxu1 %v1478_v0  ;;  %p1449_p9 = por %p1448_p8, %p1447_p7 }
  0x3e   :  { %1180 = vmatmul.mubr.msk.bf16.vlgmr.msra.gmra.mxu0 %vm117_vm1, %v1265_v5  ;;  %1188 = vmatmul.mubr.bf16.vlgmr.msra.gmra.mxu1 %v1481_v7  ;;  %p1450_p10 = pnand %p1449_p9, %p1443_p6 }
  0x3f   :  { %1192 = vmatpush3.bf16.msra.mxu0 %v1537_v2  ;;  %1195 = vmatprep.mubr.msk.bf16.mxu0 %vm1479_vm0, %v1478_v0 }
  0x40   :  { %1193 = vmatprep.subr.bf16.mxu0 %v1478_v0  ;;  %1200 = vmatpush3.bf16.msra.mxu1 %v1537_v2 }
  0x41   :  { %1203 = vmatprep.mubr.msk.bf16.mxu1 %vm1479_vm0, %v1478_v0  ;;  %1201 = vmatprep.subr.bf16.mxu1 %v1478_v0 }
  0x43   :  { %1194 = vmatpush3.bf16.msra.mxu0 %v1541_v4 }
  0x44   :  { %1207 = vmatprep.subr.bf16.mxu0 %v1478_v0  ;;  %1202 = vmatpush3.bf16.msra.mxu1 %v1541_v4 }
  0x45   :  { %1215 = vmatprep.subr.bf16.mxu1 %v1478_v0 }
  0xab   :  { %v1564_v8 = vpop.permute.xlu0 %242 }
  0xfe   :  { %v155_v9 = vpop.f32.mrf.mxu0  ;;  %v218_v10 = vpop.f32.mrf.mxu1 }
  0xff   :  { %v245_v12 = vadd.f32 %v1564_v8, %v218_v10  ;;  %v1572_v20 = vadd.f32 %v1117_v19, %v155_v9  ;;  %v225_v22 = vrot.slane %v218_v10, 1 }
 0x100   :  { %v1181_v11 = vpop.f32.mrf.mxu0  ;;  %v1189_v13 = vpop.f32.mrf.mxu1 }
 0x101   :  { %248 = vrot.lane.b32.xlu1 %v245_v12, %s1482_s5  ;;  %v247_v14 = vrot.slane %v245_v12, 1  ;;  %v228_v23 = vadd.f32 %v218_v10, %v1572_v20 }
 0x102   :  { %v158_v15 = vpop.f32.mrf.mxu0  ;;  %v221_v16 = vpop.f32.mrf.mxu1 }
 0x103   :  { %250 = vrot.lane.b32.xlu0 %v247_v14, %s1482_s5  ;;  %v1574_v21 = vadd.f32 %v1117_v19, %v158_v15  ;;  %v1125_v25 = vmul.f32 -1.442695, %v228_v23 }
 0x104   :  { %v1182_v17 = vpop.f32.mrf.mxu0  ;;  %v1190_v18 = vpop.f32.mrf.mxu1 }
 0x105   :  { %v229_v24 = vadd.f32 %v225_v22, %v1574_v21  ;;  %1266 = vpow2.f32 %v1125_v25 }
 0x107   :  { %v1126_v26 = vmul.f32 -1.442695, %v229_v24 }
 0x109   :  { %1268 = vpow2.f32 %v1126_v26 }
 0x112   :  { %v1267_v27 = vpop.eup %1266 }
 0x113   :  { %v236_v29 = vadd.f32 1.0, %v1267_v27 }
 0x115   :  { %1270 = vrcp.f32 %v236_v29 }
 0x116   :  { %v1269_v28 = vpop.eup %1268 }
 0x117   :  { %v237_v30 = vadd.f32 1.0, %v1269_v28 }
 0x119   :  { %1272 = vrcp.f32 %v237_v30 }
 0x122   :  { %v1271_v31 = vpop.eup %1270 }
 0x126   :  { %v1273_v34 = vpop.eup %1272 }
 0x173   :  { %v249_v32 = vpop.permute.xlu1 %248 }
 0x174   :  { %v254_v33 = vmul.f32 %v1271_v31, %v249_v32 }
 0x175   :  { %v251_v35 = vpop.permute.xlu0 %250 }
 0x176   :  { %v255_v36 = vmul.f32 %v1273_v34, %v251_v35  ;;  %258 = vrot.lane.b32.xlu0 %v254_v33, %s1480_s19 }
 0x178   :  { %260 = vrot.lane.b32.xlu1 %v255_v36, %s1480_s19 }
 0x1e8   :  { %v259_v37 = vpop.permute.xlu0 %258 }
 0x1e9   :  { %v264_v38 = vadd.f32 %v259_v37, %v1572_v20 }
 0x1ea   :  { %v261_v39 = vpop.permute.xlu1 %260 }
 0x1eb   :  { %1274 = vtanh.f32 %v264_v38  ;;  %v265_v40 = vadd.f32 %v261_v39, %v1574_v21 }
 0x1ed   :  { %1276 = vtanh.f32 %v265_v40 }
 0x1f8   :  { %v1275_v41 = vpop.eup %1274 }
 0x1f9   :  { %270 = vrot.lane.b32.xlu0 %v1275_v41, %s1482_s5 }
 0x1fa   :  { %v1277_v42 = vpop.eup %1276 }
 0x1fb   :  { %272 = vrot.lane.b32.xlu1 %v1277_v42, %s1482_s5 }
 0x26b   :  { %v271_v48 = vpop.permute.xlu0 %270 }
 0x26c   :  { %v276_v49 = vmul.f32 %v271_v48, %v1584_v43 }
 0x26d   :  { %v273_v51 = vpop.permute.xlu1 %272 }
 0x26e   :  { %v1597_v52 = vadd.f32 %v278_v47, %v276_v49  ;;  %v277_v53 = vmul.f32 %v273_v51, %v1586_v44 }
 0x270   :  { %v281_v54 = vadd.f32 %v279_v50, %v277_v53  ;;  %v282_v55 = vpack.c.bf16 %v1597_v52, %v1597_v52  ;;  %v388_v32 = vrot.slane %v1597_v52, 7 }
 0x272   :  { %v283_v56 = vpack.c.bf16 %v281_v54, %v281_v54  ;;  %v286_v58 = vunpack.c.l.b16 %v282_v55  ;;  %v389_v31 = vrot.slane %v281_v54, 7  ;;  %v392_v38 = vmul.f32 %v388_v32, %v1589_v45 }
 0x274   :  { %v287_v57 = vunpack.c.l.b16 %v283_v56  ;;  %v393_v34 = vmul.f32 %v389_v31, %v1592_v46 }
 0x276   :  { %v288_v59 = vrot.slane %v287_v57, 7 }
 0x278   :  { %v290_v60 = vsel %vm289_vm2, %v288_v59, %v286_v58 }
 0x279   :  { %v291_v61 = vpack.c.b16 %v290_v60, %v290_v60 }
 0x27b   :  { %1196 = vmatmul.mubr.msk.bf16.vlgmr.msra.gmra.mxu0 %vm117_vm1, %v291_v61 }
 0x27c   :  { %1208 = vmatpush3.bf16.msra.mxu0 %v1537_v2  ;;  %1211 = vmatprep.mubr.msk.bf16.mxu0 %vm1479_vm0, %v1478_v0 }
 0x27d   :  { %1209 = vmatprep.subr.bf16.mxu0 %v1478_v0 }
 0x280   :  { %1210 = vmatpush3.bf16.msra.mxu0 %v1541_v4 }
 0x281   :  { %1223 = vmatprep.subr.bf16.mxu0 %v1478_v0 }
 0x33b   :  { %v329_v62 = vpop.f32.mrf.mxu0 }
 0x33c   :  { %v353_v63 = vadd.f32 %v329_v62, %v1564_v8  ;;  %v336_v7 = vrot.slane %v329_v62, 7  ;;  %v340_v9 = vadd.f32 %v329_v62, %v1574_v21 }
 0x33d   :  { %v1197_v1 = vpop.f32.mrf.mxu0 }
 0x33e   :  { %358 = vrot.lane.b32.xlu0 %v353_v63, %s1482_s5  ;;  %v355_v3 = vrot.slane %v353_v63, 7  ;;  %v339_v10 = vadd.f32 %v336_v7, %v1572_v20  ;;  %v1129_v11 = vmul.f32 -1.442695, %v340_v9 }
 0x33f   :  { %v332_v5 = vpop.f32.mrf.mxu0 }
 0x340   :  { %356 = vrot.lane.b32.xlu1 %v355_v3, %s1482_s5  ;;  %v1128_v12 = vmul.f32 -1.442695, %v339_v10  ;;  %1278 = vpow2.f32 %v1129_v11 }
 0x341   :  { %v1198_v6 = vpop.f32.mrf.mxu0 }
 0x342   :  { %1280 = vpow2.f32 %v1128_v12 }
 0x34d   :  { %v1279_v13 = vpop.eup %1278 }
 0x34e   :  { %v348_v15 = vadd.f32 1.0, %v1279_v13 }
 0x34f   :  { %v1281_v14 = vpop.eup %1280 }
 0x350   :  { %v347_v16 = vadd.f32 1.0, %v1281_v14  ;;  %1282 = vrcp.f32 %v348_v15 }
 0x352   :  { %1284 = vrcp.f32 %v347_v16 }
 0x35d   :  { %v1283_v17 = vpop.eup %1282 }
 0x35f   :  { %v1285_v22 = vpop.eup %1284 }
 0x3b0   :  { %v359_v18 = vpop.permute.xlu0 %358 }
 0x3b1   :  { %v363_v19 = vmul.f32 %v1283_v17, %v359_v18 }
 0x3b2   :  { %v357_v23 = vpop.permute.xlu1 %356 }
 0x3b3   :  { %v362_v24 = vmul.f32 %v1285_v22, %v357_v23  ;;  %368 = vrot.lane.b32.xlu0 %v363_v19, %s1480_s19 }
 0x3b5   :  { %366 = vrot.lane.b32.xlu1 %v362_v24, %s1480_s19 }
 0x425   :  { %v369_v25 = vpop.permute.xlu0 %368 }
 0x426   :  { %v373_v26 = vadd.f32 %v369_v25, %v1574_v21 }
 0x427   :  { %v367_v27 = vpop.permute.xlu1 %366 }
 0x428   :  { %1286 = vtanh.f32 %v373_v26  ;;  %v372_v28 = vadd.f32 %v367_v27, %v1572_v20 }
 0x42a   :  { %1288 = vtanh.f32 %v372_v28 }
 0x435   :  { %v1287_v29 = vpop.eup %1286 }
 0x436   :  { %380 = vrot.lane.b32.xlu0 %v1287_v29, %s1482_s5 }
 0x437   :  { %v1289_v30 = vpop.eup %1288 }
 0x438   :  { %378 = vrot.lane.b32.xlu1 %v1289_v30, %s1482_s5 }
 0x4a8   :  { %v381_v33 = vpop.permute.xlu0 %380 }
 0x4a9   :  { %v385_v35 = vmul.f32 %v381_v33, %v1586_v44 }
 0x4aa   :  { %v379_v36 = vpop.permute.xlu1 %378 }
 0x4ab   :  { %v395_v37 = vadd.f32 %v393_v34, %v385_v35  ;;  %v384_v39 = vmul.f32 %v379_v36, %v1584_v43 }
 0x4ad   :  { %v394_v40 = vadd.f32 %v392_v38, %v384_v39  ;;  %v397_v41 = vpack.c.bf16 %v395_v37, %v395_v37  ;;  %v504_v23 = vrot.slane %v395_v37, 7 }
 0x4af   :  { %v396_v42 = vpack.c.bf16 %v394_v40, %v394_v40  ;;  %v401_v48 = vunpack.c.l.b16 %v397_v41  ;;  %v503_v24 = vrot.slane %v394_v40, 7  ;;  %v508_v26 = vmul.f32 %v504_v23, %v1592_v46 }
 0x4b1   :  { %v400_v47 = vunpack.c.l.b16 %v396_v42  ;;  %v507_v29 = vmul.f32 %v503_v24, %v1589_v45 }
 0x4b3   :  { %v402_v49 = vrot.slane %v400_v47, 1 }
 0x4b5   :  { %v403_v50 = vsel %vm289_vm2, %v401_v48, %v402_v49 }
 0x4b6   :  { %v404_v51 = vpack.c.b16 %v403_v50, %v403_v50 }
 0x4b8   :  { %1204 = vmatmul.mubr.msk.bf16.vlgmr.msra.gmra.mxu1 %vm117_vm1, %v404_v51 }
 0x4b9   :  { %1216 = vmatpush3.bf16.msra.mxu1 %v1537_v2  ;;  %1219 = vmatprep.mubr.msk.bf16.mxu1 %vm1479_vm0, %v1478_v0 }
 0x4ba   :  { %1217 = vmatprep.subr.bf16.mxu1 %v1478_v0 }
 0x4bd   :  { %1218 = vmatpush3.bf16.msra.mxu1 %v1541_v4 }
 0x4be   :  { %1231 = vmatprep.subr.bf16.mxu1 %v1478_v0 }
 0x578   :  { %v442_v52 = vpop.f32.mrf.mxu1 }
 0x579   :  { %v467_v53 = vadd.f32 %v442_v52, %v1564_v8  ;;  %v449_v59 = vrot.slane %v442_v52, 6  ;;  %v450_v60 = vrot.slane %v442_v52, 7 }
 0x57a   :  { %v1205_v54 = vpop.f32.mrf.mxu1 }
 0x57b   :  { %v470_v55 = vrot.slane %v467_v53, 7  ;;  %v469_v56 = vrot.slane %v467_v53, 6  ;;  %v453_v61 = vadd.f32 %v449_v59, %v1572_v20  ;;  %v454_v62 = vadd.f32 %v450_v60, %v1574_v21 }
 0x57c   :  { %v445_v57 = vpop.f32.mrf.mxu1 }
 0x57d   :  { %473 = vrot.lane.b32.xlu0 %v470_v55, %s1482_s5  ;;  %471 = vrot.lane.b32.xlu1 %v469_v56, %s1482_s5  ;;  %v1131_v63 = vmul.f32 -1.442695, %v453_v61  ;;  %v1132_v1 = vmul.f32 -1.442695, %v454_v62 }
 0x57e   :  { %v1206_v58 = vpop.f32.mrf.mxu1 }
 0x57f   :  { %1290 = vpow2.f32 %v1131_v63 }
 0x580   :  { %1292 = vpow2.f32 %v1132_v1 }
 0x58c   :  { %v1291_v3 = vpop.eup %1290 }
 0x58d   :  { %v1293_v5 = vpop.eup %1292  ;;  %v461_v6 = vadd.f32 1.0, %v1291_v3 }
 0x58e   :  { %v462_v7 = vadd.f32 1.0, %v1293_v5 }
 0x58f   :  { %1294 = vrcp.f32 %v461_v6 }
 0x590   :  { %1296 = vrcp.f32 %v462_v7 }
 0x59c   :  { %v1295_v9 = vpop.eup %1294 }
 0x59d   :  { %v1297_v10 = vpop.eup %1296 }
 0x5ef   :  { %v474_v11 = vpop.permute.xlu0 %473  ;;  %v472_v12 = vpop.permute.xlu1 %471 }
 0x5f0   :  { %v478_v13 = vmul.f32 %v1297_v10, %v474_v11  ;;  %v477_v14 = vmul.f32 %v1295_v9, %v472_v12 }
 0x5f2   :  { %483 = vrot.lane.b32.xlu0 %v478_v13, %s1480_s19  ;;  %481 = vrot.lane.b32.xlu1 %v477_v14, %s1480_s19 }
 0x664   :  { %v484_v15 = vpop.permute.xlu0 %483  ;;  %v482_v16 = vpop.permute.xlu1 %481 }
 0x665   :  { %v488_v17 = vadd.f32 %v484_v15, %v1574_v21  ;;  %v487_v18 = vadd.f32 %v482_v16, %v1572_v20 }
 0x667   :  { %1298 = vtanh.f32 %v488_v17 }
 0x668   :  { %1300 = vtanh.f32 %v487_v18 }
 0x674   :  { %v1299_v19 = vpop.eup %1298 }
 0x675   :  { %v1301_v22 = vpop.eup %1300  ;;  %495 = vrot.lane.b32.xlu0 %v1299_v19, %s1482_s5 }
 0x676   :  { %493 = vrot.lane.b32.xlu1 %v1301_v22, %s1482_s5 }
 0x6e7   :  { %v496_v25 = vpop.permute.xlu0 %495 }
 0x6e8   :  { %v500_v27 = vmul.f32 %v496_v25, %v1586_v44  ;;  %v494_v28 = vpop.permute.xlu1 %493 }
 0x6e9   :  { %v499_v30 = vmul.f32 %v494_v28, %v1584_v43 }
 0x6ea   :  { %v510_v31 = vadd.f32 %v508_v26, %v500_v27 }
 0x6eb   :  { %v1649_v32 = vadd.f32 %v507_v29, %v499_v30 }
 0x6ec   :  { %v512_v33 = vpack.c.bf16 %v510_v31, %v510_v31  ;;  %v620_v14 = vrot.slane %v510_v31, 7 }
 0x6ed   :  { %v511_v34 = vpack.c.bf16 %v1649_v32, %v1649_v32  ;;  %v619_v15 = vrot.slane %v1649_v32, 7 }
 0x6ee   :  { %v516_v35 = vunpack.c.l.b16 %v512_v33  ;;  %v624_v17 = vmul.f32 %v620_v14, %v1592_v46 }
 0x6ef   :  { %v515_v36 = vunpack.c.l.b16 %v511_v34  ;;  %v623_v22 = vmul.f32 %v619_v15, %v1589_v45 }
 0x6f0   :  { %v518_v37 = vrot.slane %v516_v35, 1 }
 0x6f1   :  { %v517_v38 = vrot.slane %v515_v36, 2 }
 0x6f3   :  { %v519_v39 = vsel %vm289_vm2, %v518_v37, %v517_v38 }
 0x6f4   :  { %v520_v40 = vpack.c.b16 %v519_v39, %v519_v39 }
 0x6f6   :  { %1212 = vmatmul.mubr.msk.bf16.vlgmr.msra.gmra.mxu0 %vm117_vm1, %v520_v40 }
 0x6f7   :  { %1224 = vmatpush3.bf16.msra.mxu0 %v1537_v2  ;;  %1227 = vmatprep.mubr.msk.bf16.mxu0 %vm1479_vm0, %v1478_v0 }
 0x6f8   :  { %1225 = vmatprep.subr.bf16.mxu0 %v1478_v0 }
 0x6fb   :  { %1226 = vmatpush3.bf16.msra.mxu0 %v1541_v4 }
 0x6fc   :  { %1239 = vmatprep.subr.bf16.mxu0 %v1478_v0 }
 0x7b6   :  { %v558_v41 = vpop.f32.mrf.mxu0 }
 0x7b7   :  { %v583_v42 = vadd.f32 %v558_v41, %v1564_v8  ;;  %v565_v52 = vrot.slane %v558_v41, 5  ;;  %v566_v53 = vrot.slane %v558_v41, 6 }
 0x7b8   :  { %v1213_v47 = vpop.f32.mrf.mxu0 }
 0x7b9   :  { %v586_v48 = vrot.slane %v583_v42, 6  ;;  %v585_v49 = vrot.slane %v583_v42, 5  ;;  %v569_v54 = vadd.f32 %v565_v52, %v1572_v20  ;;  %v570_v55 = vadd.f32 %v566_v53, %v1574_v21 }
 0x7ba   :  { %v561_v50 = vpop.f32.mrf.mxu0 }
 0x7bb   :  { %589 = vrot.lane.b32.xlu0 %v586_v48, %s1482_s5  ;;  %587 = vrot.lane.b32.xlu1 %v585_v49, %s1482_s5  ;;  %v1134_v56 = vmul.f32 -1.442695, %v569_v54  ;;  %v1135_v57 = vmul.f32 -1.442695, %v570_v55 }
 0x7bc   :  { %v1214_v51 = vpop.f32.mrf.mxu0 }
 0x7bd   :  { %1302 = vpow2.f32 %v1134_v56 }
 0x7be   :  { %1304 = vpow2.f32 %v1135_v57 }
 0x7ca   :  { %v1303_v58 = vpop.eup %1302 }
 0x7cb   :  { %v1305_v59 = vpop.eup %1304  ;;  %v577_v60 = vadd.f32 1.0, %v1303_v58 }
 0x7cc   :  { %v578_v61 = vadd.f32 1.0, %v1305_v59 }
 0x7cd   :  { %1306 = vrcp.f32 %v577_v60 }
 0x7ce   :  { %1308 = vrcp.f32 %v578_v61 }
 0x7da   :  { %v1307_v62 = vpop.eup %1306 }
 0x7db   :  { %v1309_v63 = vpop.eup %1308 }
 0x82d   :  { %v590_v1 = vpop.permute.xlu0 %589  ;;  %v588_v3 = vpop.permute.xlu1 %587 }
 0x82e   :  { %v594_v5 = vmul.f32 %v1309_v63, %v590_v1  ;;  %v593_v6 = vmul.f32 %v1307_v62, %v588_v3 }
 0x830   :  { %599 = vrot.lane.b32.xlu0 %v594_v5, %s1480_s19  ;;  %597 = vrot.lane.b32.xlu1 %v593_v6, %s1480_s19 }
 0x8a2   :  { %v600_v7 = vpop.permute.xlu0 %599  ;;  %v598_v9 = vpop.permute.xlu1 %597 }
 0x8a3   :  { %v604_v10 = vadd.f32 %v600_v7, %v1574_v21  ;;  %v603_v11 = vadd.f32 %v598_v9, %v1572_v20 }
 0x8a5   :  { %1310 = vtanh.f32 %v604_v10 }
 0x8a6   :  { %1312 = vtanh.f32 %v603_v11 }
 0x8b2   :  { %v1311_v12 = vpop.eup %1310 }
 0x8b3   :  { %v1313_v13 = vpop.eup %1312  ;;  %611 = vrot.lane.b32.xlu0 %v1311_v12, %s1482_s5 }
 0x8b4   :  { %609 = vrot.lane.b32.xlu1 %v1313_v13, %s1482_s5 }
 0x925   :  { %v612_v16 = vpop.permute.xlu0 %611 }
 0x926   :  { %v616_v18 = vmul.f32 %v612_v16, %v1586_v44  ;;  %v610_v19 = vpop.permute.xlu1 %609 }
 0x927   :  { %v615_v23 = vmul.f32 %v610_v19, %v1584_v43 }
 0x928   :  { %v626_v24 = vadd.f32 %v624_v17, %v616_v18 }
 0x929   :  { %v625_v25 = vadd.f32 %v623_v22, %v615_v23 }
 0x92a   :  { %v628_v26 = vpack.c.bf16 %v626_v24, %v626_v24  ;;  %v736_v6 = vrot.slane %v626_v24, 7 }
 0x92b   :  { %v627_v27 = vpack.c.bf16 %v625_v25, %v625_v25  ;;  %v735_v7 = vrot.slane %v625_v25, 7 }
 0x92c   :  { %v632_v28 = vunpack.c.l.b16 %v628_v26  ;;  %v740_v10 = vmul.f32 %v736_v6, %v1592_v46 }
 0x92d   :  { %v631_v29 = vunpack.c.l.b16 %v627_v27  ;;  %v739_v13 = vmul.f32 %v735_v7, %v1589_v45 }
 0x92e   :  { %v634_v30 = vrot.slane %v632_v28, 2 }
 0x92f   :  { %v633_v31 = vrot.slane %v631_v29, 3 }
 0x931   :  { %v635_v32 = vsel %vm289_vm2, %v634_v30, %v633_v31 }
 0x932   :  { %v636_v33 = vpack.c.b16 %v635_v32, %v635_v32 }
 0x934   :  { %1220 = vmatmul.mubr.msk.bf16.vlgmr.msra.gmra.mxu1 %vm117_vm1, %v636_v33 }
 0x935   :  { %1232 = vmatpush3.bf16.msra.mxu1 %v1537_v2  ;;  %1235 = vmatprep.mubr.msk.bf16.mxu1 %vm1479_vm0, %v1478_v0 }
 0x936   :  { %1233 = vmatprep.subr.bf16.mxu1 %v1478_v0 }
 0x939   :  { %1234 = vmatpush3.bf16.msra.mxu1 %v1541_v4 }
 0x9f4   :  { %v674_v34 = vpop.f32.mrf.mxu1 }
 0x9f5   :  { %v699_v35 = vadd.f32 %v674_v34, %v1564_v8  ;;  %v681_v41 = vrot.slane %v674_v34, 4  ;;  %v682_v42 = vrot.slane %v674_v34, 5 }
 0x9f6   :  { %v1221_v36 = vpop.f32.mrf.mxu1 }
 0x9f7   :  { %v702_v37 = vrot.slane %v699_v35, 5  ;;  %v701_v38 = vrot.slane %v699_v35, 4  ;;  %v685_v47 = vadd.f32 %v681_v41, %v1572_v20  ;;  %v686_v48 = vadd.f32 %v682_v42, %v1574_v21 }
 0x9f8   :  { %v677_v39 = vpop.f32.mrf.mxu1 }
 0x9f9   :  { %705 = vrot.lane.b32.xlu0 %v702_v37, %s1482_s5  ;;  %703 = vrot.lane.b32.xlu1 %v701_v38, %s1482_s5  ;;  %v1137_v49 = vmul.f32 -1.442695, %v685_v47  ;;  %v1138_v50 = vmul.f32 -1.442695, %v686_v48 }
 0x9fa   :  { %v1222_v40 = vpop.f32.mrf.mxu1 }
 0x9fb   :  { %1314 = vpow2.f32 %v1137_v49 }
 0x9fc   :  { %1316 = vpow2.f32 %v1138_v50 }
 0xa08   :  { %v1315_v51 = vpop.eup %1314 }
 0xa09   :  { %v1317_v52 = vpop.eup %1316  ;;  %v693_v53 = vadd.f32 1.0, %v1315_v51 }
 0xa0a   :  { %v694_v54 = vadd.f32 1.0, %v1317_v52 }
 0xa0b   :  { %1318 = vrcp.f32 %v693_v53 }
 0xa0c   :  { %1320 = vrcp.f32 %v694_v54 }
 0xa18   :  { %v1319_v55 = vpop.eup %1318 }
 0xa19   :  { %v1321_v56 = vpop.eup %1320 }
 0xa6b   :  { %v706_v57 = vpop.permute.xlu0 %705  ;;  %v704_v58 = vpop.permute.xlu1 %703 }
 0xa6c   :  { %v710_v59 = vmul.f32 %v1321_v56, %v706_v57  ;;  %v709_v60 = vmul.f32 %v1319_v55, %v704_v58 }
 0xa6e   :  { %715 = vrot.lane.b32.xlu0 %v710_v59, %s1480_s19  ;;  %713 = vrot.lane.b32.xlu1 %v709_v60, %s1480_s19 }
 0xae0   :  { %v716_v61 = vpop.permute.xlu0 %715  ;;  %v714_v62 = vpop.permute.xlu1 %713 }
 0xae1   :  { %v720_v63 = vadd.f32 %v716_v61, %v1574_v21  ;;  %v719_v1 = vadd.f32 %v714_v62, %v1572_v20 }
 0xae3   :  { %1322 = vtanh.f32 %v720_v63 }
 0xae4   :  { %1324 = vtanh.f32 %v719_v1 }
 0xaf0   :  { %v1323_v3 = vpop.eup %1322 }
 0xaf1   :  { %v1325_v5 = vpop.eup %1324  ;;  %727 = vrot.lane.b32.xlu0 %v1323_v3, %s1482_s5 }
 0xaf2   :  { %725 = vrot.lane.b32.xlu1 %v1325_v5, %s1482_s5 }
 0xb63   :  { %v728_v9 = vpop.permute.xlu0 %727 }
 0xb64   :  { %v732_v11 = vmul.f32 %v728_v9, %v1586_v44  ;;  %v726_v12 = vpop.permute.xlu1 %725 }
 0xb65   :  { %v731_v14 = vmul.f32 %v726_v12, %v1584_v43 }
 0xb66   :  { %v742_v15 = vadd.f32 %v740_v10, %v732_v11 }
 0xb67   :  { %v741_v16 = vadd.f32 %v739_v13, %v731_v14 }
 0xb68   :  { %v744_v17 = vpack.c.bf16 %v742_v15, %v742_v15  ;;  %v852_v57 = vrot.slane %v742_v15, 7 }
 0xb69   :  { %v743_v18 = vpack.c.bf16 %v741_v16, %v741_v16  ;;  %v851_v58 = vrot.slane %v741_v16, 7 }
 0xb6a   :  { %v748_v19 = vunpack.c.l.b16 %v744_v17  ;;  %v856_v60 = vmul.f32 %v852_v57, %v1592_v46 }
 0xb6b   :  { %v747_v22 = vunpack.c.l.b16 %v743_v18  ;;  %v855_v63 = vmul.f32 %v851_v58, %v1589_v45 }
 0xb6c   :  { %v750_v23 = vrot.slane %v748_v19, 3 }
 0xb6d   :  { %v749_v26 = vrot.slane %v747_v22, 4 }
 0xb6f   :  { %v751_v24 = vsel %vm289_vm2, %v750_v23, %v749_v26 }
 0xb70   :  { %v752_v25 = vpack.c.b16 %v751_v24, %v751_v24 }
 0xb72   :  { %1228 = vmatmul.mubr.msk.bf16.vlgmr.msra.gmra.mxu0 %vm117_vm1, %v752_v25 }
 0xb73   :  { %1240 = vmatpush3.bf16.msra.mxu0 %v1537_v2  ;;  %1243 = vmatprep.mubr.msk.bf16.mxu0 %vm1479_vm0, %v1478_v0 }
 0xb74   :  { %1241 = vmatprep.subr.bf16.mxu0 %v1478_v0 }
 0xb77   :  { %1242 = vmatpush3.bf16.msra.mxu0 %v1541_v4 }
 0xc32   :  { %v790_v27 = vpop.f32.mrf.mxu0 }
 0xc33   :  { %v815_v28 = vadd.f32 %v790_v27, %v1564_v8  ;;  %v797_v2 = vrot.slane %v790_v27, 3  ;;  %v798_v34 = vrot.slane %v790_v27, 4 }
 0xc34   :  { %v1229_v29 = vpop.f32.mrf.mxu0 }
 0xc35   :  { %v818_v30 = vrot.slane %v815_v28, 4  ;;  %v817_v31 = vrot.slane %v815_v28, 3  ;;  %v801_v35 = vadd.f32 %v797_v2, %v1572_v20  ;;  %v802_v0 = vadd.f32 %v798_v34, %v1574_v21 }
 0xc36   :  { %v793_v32 = vpop.f32.mrf.mxu0 }
 0xc37   :  { %821 = vrot.lane.b32.xlu0 %v818_v30, %s1482_s5  ;;  %819 = vrot.lane.b32.xlu1 %v817_v31, %s1482_s5  ;;  %v1140_v36 = vmul.f32 -1.442695, %v801_v35  ;;  %v1141_v4 = vmul.f32 -1.442695, %v802_v0 }
 0xc38   :  { %v1230_v33 = vpop.f32.mrf.mxu0 }
 0xc39   :  { %1326 = vpow2.f32 %v1140_v36 }
 0xc3a   :  { %1328 = vpow2.f32 %v1141_v4 }
 0xc46   :  { %v1327_v37 = vpop.eup %1326 }
 0xc47   :  { %v1329_v38 = vpop.eup %1328  ;;  %v809_v39 = vadd.f32 1.0, %v1327_v37 }
 0xc48   :  { %v810_v40 = vadd.f32 1.0, %v1329_v38 }
 0xc49   :  { %1330 = vrcp.f32 %v809_v39 }
 0xc4a   :  { %1332 = vrcp.f32 %v810_v40 }
 0xc56   :  { %v1331_v41 = vpop.eup %1330 }
 0xc57   :  { %v1333_v42 = vpop.eup %1332 }
 0xca9   :  { %v822_v47 = vpop.permute.xlu0 %821  ;;  %v820_v48 = vpop.permute.xlu1 %819 }
 0xcaa   :  { %v826_v49 = vmul.f32 %v1333_v42, %v822_v47  ;;  %v825_v50 = vmul.f32 %v1331_v41, %v820_v48 }
 0xcac   :  { %831 = vrot.lane.b32.xlu0 %v826_v49, %s1480_s19  ;;  %829 = vrot.lane.b32.xlu1 %v825_v50, %s1480_s19 }
 0xd1e   :  { %v832_v51 = vpop.permute.xlu0 %831  ;;  %v830_v52 = vpop.permute.xlu1 %829 }
 0xd1f   :  { %v836_v53 = vadd.f32 %v832_v51, %v1574_v21  ;;  %v835_v54 = vadd.f32 %v830_v52, %v1572_v20 }
 0xd21   :  { %1334 = vtanh.f32 %v836_v53 }
 0xd22   :  { %1336 = vtanh.f32 %v835_v54 }
 0xd2e   :  { %v1335_v55 = vpop.eup %1334 }
 0xd2f   :  { %v1337_v56 = vpop.eup %1336  ;;  %843 = vrot.lane.b32.xlu0 %v1335_v55, %s1482_s5 }
 0xd30   :  { %841 = vrot.lane.b32.xlu1 %v1337_v56, %s1482_s5 }
 0xda1   :  { %v844_v59 = vpop.permute.xlu0 %843 }
 0xda2   :  { %v848_v61 = vmul.f32 %v844_v59, %v1586_v44  ;;  %v842_v62 = vpop.permute.xlu1 %841 }
 0xda3   :  { %v847_v1 = vmul.f32 %v842_v62, %v1584_v43 }
 0xda4   :  { %v858_v3 = vadd.f32 %v856_v60, %v848_v61 }
 0xda5   :  { %v857_v5 = vadd.f32 %v855_v63, %v847_v1 }
 0xda6   :  { %v860_v6 = vpack.c.bf16 %v858_v3, %v858_v3  ;;  %v968_v47 = vrot.slane %v858_v3, 7 }
 0xda7   :  { %v859_v7 = vpack.c.bf16 %v857_v5, %v857_v5  ;;  %v967_v48 = vrot.slane %v857_v5, 7 }
 0xda8   :  { %v864_v9 = vunpack.c.l.b16 %v860_v6  ;;  %v972_v50 = vmul.f32 %v968_v47, %v1592_v46 }
 0xda9   :  { %v863_v10 = vunpack.c.l.b16 %v859_v7  ;;  %v971_v53 = vmul.f32 %v967_v48, %v1589_v45 }
 0xdaa   :  { %v866_v11 = vrot.slane %v864_v9, 4 }
 0xdab   :  { %v865_v12 = vrot.slane %v863_v10, 5 }
 0xdad   :  { %v867_v13 = vsel %vm289_vm2, %v866_v11, %v865_v12 }
 0xdae   :  { %v868_v14 = vpack.c.b16 %v867_v13, %v867_v13 }
 0xdb0   :  { %1236 = vmatmul.mubr.msk.bf16.vlgmr.msra.gmra.mxu1 %vm117_vm1, %v868_v14 }
 0xe70   :  { %v906_v15 = vpop.f32.mrf.mxu1 }
 0xe71   :  { %v931_v16 = vadd.f32 %v906_v15, %v1564_v8  ;;  %v913_v26 = vrot.slane %v906_v15, 2  ;;  %v914_v24 = vrot.slane %v906_v15, 3 }
 0xe72   :  { %v1237_v17 = vpop.f32.mrf.mxu1 }
 0xe73   :  { %v934_v18 = vrot.slane %v931_v16, 3  ;;  %v933_v19 = vrot.slane %v931_v16, 2  ;;  %v917_v25 = vadd.f32 %v913_v26, %v1572_v20  ;;  %v918_v27 = vadd.f32 %v914_v24, %v1574_v21 }
 0xe74   :  { %v909_v22 = vpop.f32.mrf.mxu1 }
 0xe75   :  { %937 = vrot.lane.b32.xlu0 %v934_v18, %s1482_s5  ;;  %935 = vrot.lane.b32.xlu1 %v933_v19, %s1482_s5  ;;  %v1143_v28 = vmul.f32 -1.442695, %v917_v25  ;;  %v1144_v29 = vmul.f32 -1.442695, %v918_v27 }
 0xe76   :  { %v1238_v23 = vpop.f32.mrf.mxu1 }
 0xe77   :  { %1338 = vpow2.f32 %v1143_v28 }
 0xe78   :  { %1340 = vpow2.f32 %v1144_v29 }
 0xe84   :  { %v1339_v30 = vpop.eup %1338 }
 0xe85   :  { %v1341_v31 = vpop.eup %1340  ;;  %v925_v32 = vadd.f32 1.0, %v1339_v30 }
 0xe86   :  { %v926_v33 = vadd.f32 1.0, %v1341_v31 }
 0xe87   :  { %1342 = vrcp.f32 %v925_v32 }
 0xe88   :  { %1344 = vrcp.f32 %v926_v33 }
 0xe94   :  { %v1343_v2 = vpop.eup %1342 }
 0xe95   :  { %v1345_v34 = vpop.eup %1344 }
 0xee7   :  { %v938_v35 = vpop.permute.xlu0 %937  ;;  %v936_v0 = vpop.permute.xlu1 %935 }
 0xee8   :  { %v942_v36 = vmul.f32 %v1345_v34, %v938_v35  ;;  %v941_v4 = vmul.f32 %v1343_v2, %v936_v0 }
 0xeea   :  { %947 = vrot.lane.b32.xlu0 %v942_v36, %s1480_s19  ;;  %945 = vrot.lane.b32.xlu1 %v941_v4, %s1480_s19 }
 0xf5c   :  { %v948_v37 = vpop.permute.xlu0 %947  ;;  %v946_v38 = vpop.permute.xlu1 %945 }
 0xf5d   :  { %v952_v39 = vadd.f32 %v948_v37, %v1574_v21  ;;  %v951_v40 = vadd.f32 %v946_v38, %v1572_v20 }
 0xf5f   :  { %1346 = vtanh.f32 %v952_v39 }
 0xf60   :  { %1348 = vtanh.f32 %v951_v40 }
 0xf6c   :  { %v1347_v41 = vpop.eup %1346 }
 0xf6d   :  { %v1349_v42 = vpop.eup %1348  ;;  %959 = vrot.lane.b32.xlu0 %v1347_v41, %s1482_s5 }
 0xf6e   :  { %957 = vrot.lane.b32.xlu1 %v1349_v42, %s1482_s5 }
 0xfdf   :  { %v960_v49 = vpop.permute.xlu0 %959 }
 0xfe0   :  { %v964_v51 = vmul.f32 %v960_v49, %v1586_v44  ;;  %v958_v52 = vpop.permute.xlu1 %957 }
 0xfe1   :  { %v963_v54 = vmul.f32 %v958_v52, %v1584_v43 }
 0xfe2   :  { %v974_v55 = vadd.f32 %v972_v50, %v964_v51 }
 0xfe3   :  { %v973_v56 = vadd.f32 %v971_v53, %v963_v54 }
 0xfe4   :  { %v976_v57 = vpack.c.bf16 %v974_v55, %v974_v55  ;;  %v1084_v34 = vrot.slane %v974_v55, 7 }
 0xfe5   :  { %v975_v58 = vpack.c.bf16 %v973_v56, %v973_v56  ;;  %v1083_v35 = vrot.slane %v973_v56, 7 }
 0xfe6   :  { %v980_v59 = vunpack.c.l.b16 %v976_v57  ;;  %v1088_v36 = vmul.f32 %v1084_v34, %v1592_v46 }
 0xfe7   :  { %v979_v60 = vunpack.c.l.b16 %v975_v58 }
 0xfe8   :  { %v982_v61 = vrot.slane %v980_v59, 5 }
 0xfe9   :  { %v981_v62 = vrot.slane %v979_v60, 6 }
 0xfeb   :  { %v983_v63 = vsel %vm289_vm2, %v982_v61, %v981_v62 }
 0xfec   :  { %v984_v1 = vpack.c.b16 %v983_v63, %v983_v63 }
 0xfee   :  { %1244 = vmatmul.mubr.msk.bf16.vlgmr.msra.gmra.mxu0 %vm117_vm1, %v984_v1 }
0x10ae   :  { %v1022_v3 = vpop.f32.mrf.mxu0 }
0x10af   :  { %v1047_v5 = vadd.f32 %v1022_v3, %v1564_v8  ;;  %v1029_v12 = vrot.slane %v1022_v3, 1  ;;  %v1030_v13 = vrot.slane %v1022_v3, 2 }
0x10b0   :  { %v1245_v6 = vpop.f32.mrf.mxu0 }
0x10b1   :  { %v1050_v7 = vrot.slane %v1047_v5, 2  ;;  %v1049_v9 = vrot.slane %v1047_v5, 1  ;;  %v1033_v14 = vadd.f32 %v1029_v12, %v1572_v20  ;;  %v1034_v15 = vadd.f32 %v1030_v13, %v1574_v21 }
0x10b2   :  { %v1025_v10 = vpop.f32.mrf.mxu0 }
0x10b3   :  { %1053 = vrot.lane.b32.xlu1 %v1050_v7, %s1482_s5  ;;  %1051 = vrot.lane.b32.xlu0 %v1049_v9, %s1482_s5  ;;  %v1146_v16 = vmul.f32 -1.442695, %v1033_v14  ;;  %v1147_v17 = vmul.f32 -1.442695, %v1034_v15 }
0x10b4   :  { %v1246_v11 = vpop.f32.mrf.mxu0 }
0x10b5   :  { %1350 = vpow2.f32 %v1146_v16 }
0x10b6   :  { %1352 = vpow2.f32 %v1147_v17 }
0x10c2   :  { %v1351_v8 = vpop.eup %1350 }
0x10c3   :  { %v1353_v18 = vpop.eup %1352  ;;  %v1041_v19 = vadd.f32 1.0, %v1351_v8 }
0x10c4   :  { %v1042_v22 = vadd.f32 1.0, %v1353_v18 }
0x10c5   :  { %1354 = vrcp.f32 %v1041_v19 }
0x10c6   :  { %1356 = vrcp.f32 %v1042_v22 }
0x10d2   :  { %v1355_v23 = vpop.eup %1354 }
0x10d3   :  { %v1357_v26 = vpop.eup %1356 }
0x1125   :  { %v1054_v24 = vpop.permute.xlu1 %1053  ;;  %v1052_v25 = vpop.permute.xlu0 %1051 }
0x1126   :  { %v1058_v27 = vmul.f32 %v1357_v26, %v1054_v24  ;;  %v1057_v28 = vmul.f32 %v1355_v23, %v1052_v25 }
0x1128   :  { %1063 = vrot.lane.b32.xlu1 %v1058_v27, %s1480_s19  ;;  %1061 = vrot.lane.b32.xlu0 %v1057_v28, %s1480_s19 }
0x119a   :  { %v1064_v29 = vpop.permute.xlu1 %1063  ;;  %v1062_v30 = vpop.permute.xlu0 %1061 }
0x119b   :  { %v1068_v31 = vadd.f32 %v1064_v29, %v1574_v21  ;;  %v1067_v32 = vadd.f32 %v1062_v30, %v1572_v20  ;;  %v1087_v21 = vmul.f32 %v1083_v35, %v1589_v45 }
0x119d   :  { %1358 = vtanh.f32 %v1068_v31 }
0x119e   :  { %1360 = vtanh.f32 %v1067_v32 }
0x11aa   :  { %v1359_v33 = vpop.eup %1358 }
0x11ab   :  { %v1361_v2 = vpop.eup %1360  ;;  %1075 = vrot.lane.b32.xlu1 %v1359_v33, %s1482_s5 }
0x11ac   :  { %1073 = vrot.lane.b32.xlu0 %v1361_v2, %s1482_s5 }
0x121d   :  { %v1076_v0 = vpop.permute.xlu1 %1075 }
0x121e   :  { %v1080_v4 = vmul.f32 %v1076_v0, %v1586_v44  ;;  %v1074_v37 = vpop.permute.xlu0 %1073 }
0x121f   :  { %v1079_v20 = vmul.f32 %v1074_v37, %v1584_v43 }
0x1220   :  { %v1090_v38 = vadd.f32 %v1088_v36, %v1080_v4 }
0x1221   :  { %v1089_v39 = vadd.f32 %v1087_v21, %v1079_v20 }
0x1222   :  { %v1093_v40 = vrot.slane %v1090_v38, 7 }
0x1223   :  { %1097 = vst.msk [vmem:[#allocation10 - $0x7] sm:$0x80] %vm1096_vm3, %v1089_v39 }
0x1224   :  { %1099 = vst.msk [vmem:[#allocation10 + $0x1] sm:$0x1] %vm1098_vm4, %v1093_v40 }
0x1225   :  { %1453 = shalt.err (!%p1450_p10)
}
0x1226   :  { %1109 = dma.vmem_to_hbm [thread:$0]  %s1107_s22, 32, %s1764_s6, [#allocation4]  }
0x1227   :  { %1468 = dma.done.wait [#allocation4], 32  }
0x1228   :  { %1469 = vsyncadd [#allocation4], 4294967264 }
0x1229   :  { %1113 = vsyncpa [#allocation3], 1 }
0x122a   :  { %1114 = vsyncpa [#allocation6], 1 }
0x122b   :  { %1115 = vsyncpa [#allocation9], 1 }
0x122c   :  { %1116 = vsyncpa [#allocation4], 1 }

</bundles_post_ra>
